<compile_context>
chip_gen: v7x
topology: tpu7x:2x2x1
jax: 0.10.0
libtpu: 0.0.40
codegen_flags: <defaults>
</compile_context>

<pallas_src>
import functools

import jax
import jax.numpy as jnp
from jax.experimental import pallas as pl
from jax.experimental.pallas import tpu as pltpu

_LN_EPS = 1e-5
_GELU_C = 0.7978845608028654  # sqrt(2/pi)


def _gelu_tanh(x):
    return 0.5 * x * (1.0 + jnp.tanh(_GELU_C * (x + 0.044715 * x * x * x)))


# --------------------------------------------------------------------------
# Kernel 1: fused LayerNorm + Linear (+ optional GELU)
# --------------------------------------------------------------------------
def _ln_matmul_kernel(x_ref, g_ref, b_ref, w_ref, bias_ref, o_ref, *, apply_gelu):
    xf = x_ref[...].astype(jnp.float32)
    mu = jnp.mean(xf, axis=-1, keepdims=True)
    xc = xf - mu
    var = jnp.mean(xc * xc, axis=-1, keepdims=True)
    xn = xc * jax.lax.rsqrt(var + _LN_EPS)
    xn = xn * g_ref[...].astype(jnp.float32) + b_ref[...].astype(jnp.float32)
    acc = jnp.dot(xn.astype(w_ref.dtype), w_ref[...],
                  preferred_element_type=jnp.float32)
    acc = acc + bias_ref[...].astype(jnp.float32)
    if apply_gelu:
        acc = _gelu_tanh(acc)
    o_ref[...] = acc.astype(o_ref.dtype)


def ln_linear(x2d, gamma, beta, w, bias, *, apply_gelu, tm):
    BN, C = x2d.shape
    D = w.shape[1]
    grid = (pl.cdiv(BN, tm),)
    ce = pl.CostEstimate(
        flops=2 * BN * C * D + 8 * BN * C,
        transcendentals=(BN * D if apply_gelu else 0) + BN,
        bytes_accessed=4 * (BN * C + C * D + BN * D + 2 * C + D),
    )
    return pl.pallas_call(
        functools.partial(_ln_matmul_kernel, apply_gelu=apply_gelu),
        out_shape=jax.ShapeDtypeStruct((BN, D), x2d.dtype),
        grid_spec=pl.GridSpec(
            grid=grid,
            in_specs=[
                pl.BlockSpec((tm, C), lambda i: (i, 0)),   # x tile (pipelined)
                pl.BlockSpec((1, C), lambda i: (0, 0)),    # gamma (resident)
                pl.BlockSpec((1, C), lambda i: (0, 0)),    # beta  (resident)
                pl.BlockSpec((C, D), lambda i: (0, 0)),    # W     (resident)
                pl.BlockSpec((1, D), lambda i: (0, 0)),    # bias  (resident)
            ],
            out_specs=pl.BlockSpec((tm, D), lambda i: (i, 0)),
        ),
        compiler_params=pltpu.CompilerParams(dimension_semantics=("parallel",)),
        cost_estimate=ce,
    )(x2d, gamma.reshape(1, -1), beta.reshape(1, -1), w, bias.reshape(1, -1))


# --------------------------------------------------------------------------
# Kernel 2: Linear + bias + residual add (fused epilogue)
# --------------------------------------------------------------------------
def _matmul_bias_res_kernel(x_ref, w_ref, b_ref, r_ref, o_ref):
    acc = jnp.dot(x_ref[...].astype(w_ref.dtype), w_ref[...],
                  preferred_element_type=jnp.float32)
    acc = acc + b_ref[...].astype(jnp.float32) + r_ref[...].astype(jnp.float32)
    o_ref[...] = acc.astype(o_ref.dtype)


def linear_residual(x2d, w, bias, res2d, *, tm):
    BN, C = x2d.shape
    D = w.shape[1]
    grid = (pl.cdiv(BN, tm),)
    ce = pl.CostEstimate(
        flops=2 * BN * C * D + 2 * BN * D,
        transcendentals=0,
        bytes_accessed=4 * (BN * C + C * D + 2 * BN * D + D),
    )
    return pl.pallas_call(
        _matmul_bias_res_kernel,
        out_shape=jax.ShapeDtypeStruct((BN, D), x2d.dtype),
        grid_spec=pl.GridSpec(
            grid=grid,
            in_specs=[
                pl.BlockSpec((tm, C), lambda i: (i, 0)),   # x tile
                pl.BlockSpec((C, D), lambda i: (0, 0)),    # W (resident)
                pl.BlockSpec((1, D), lambda i: (0, 0)),    # bias (resident)
                pl.BlockSpec((tm, D), lambda i: (i, 0)),   # residual tile
            ],
            out_specs=pl.BlockSpec((tm, D), lambda i: (i, 0)),
        ),
        compiler_params=pltpu.CompilerParams(dimension_semantics=("parallel",)),
        cost_estimate=ce,
    )(x2d, w, bias.reshape(1, -1), res2d)


# --------------------------------------------------------------------------
# Kernel 3: per-(batch, head) self-attention (full softmax, small seq)
# --------------------------------------------------------------------------
def _attn_kernel(q_ref, k_ref, v_ref, o_ref, *, scale):
    _, _, n, d = q_ref.shape
    q = q_ref[...].reshape(n, d).astype(jnp.float32)
    k = k_ref[...].reshape(n, d).astype(jnp.float32)
    v = v_ref[...].reshape(n, d)
    # q @ k^T without materializing the transpose
    s = jax.lax.dot_general(q, k, (((1,), (1,)), ((), ())),
                            preferred_element_type=jnp.float32) * scale
    m = jnp.max(s, axis=-1, keepdims=True)
    p = jnp.exp(s - m)
    l = jnp.sum(p, axis=-1, keepdims=True)
    ctx = jnp.dot(p.astype(v.dtype), v, preferred_element_type=jnp.float32)
    o_ref[...] = (ctx / l).reshape(1, 1, n, d).astype(o_ref.dtype)


def attention(q, k, v, *, scale):
    B, H, N, hd = q.shape
    spec = pl.BlockSpec((1, 1, N, hd), lambda b, h: (b, h, 0, 0))
    ce = pl.CostEstimate(
        flops=4 * B * H * N * N * hd,
        transcendentals=B * H * N * N,
        bytes_accessed=4 * (4 * B * H * N * hd),
    )
    return pl.pallas_call(
        functools.partial(_attn_kernel, scale=scale),
        out_shape=jax.ShapeDtypeStruct((B, H, N, hd), q.dtype),
        grid_spec=pl.GridSpec(
            grid=(B, H),
            in_specs=[spec, spec, spec],
            out_specs=spec,
        ),
        compiler_params=pltpu.CompilerParams(
            dimension_semantics=("parallel", "parallel")),
        cost_estimate=ce,
    )(q, k, v)


# --------------------------------------------------------------------------
# EncoderBlock (JAX/Pallas port of the PyTorch module, eval-mode forward)
# --------------------------------------------------------------------------
class EncoderBlockPallas:
    def __init__(self, embed_dim, num_heads, mlp_ratio, dropout, key,
                 row_block=256, compute_dtype=jnp.float32):
        assert embed_dim % num_heads == 0
        self.embed_dim = embed_dim
        self.num_heads = num_heads
        self.head_dim = embed_dim // num_heads
        self.scale = float(self.head_dim) ** -0.5
        self.hidden = int(embed_dim * mlp_ratio)
        self.dropout = dropout            # identity in eval mode
        self.row_block = row_block        # token-axis tile (TM); 256 fits v7x 64MiB VMEM

        ks = jax.random.split(key, 12)
        init = lambda k, shape: 0.02 * jax.random.normal(k, shape, jnp.float32)
        # weights pre-transposed to (in, out); optionally stored in bf16 for v6e/v7x
        self.w_qkv = init(ks[0], (embed_dim, 3 * embed_dim)).astype(compute_dtype)
        self.b_qkv = init(ks[1], (3 * embed_dim,))
        self.w_proj = init(ks[2], (embed_dim, embed_dim)).astype(compute_dtype)
        self.b_proj = init(ks[3], (embed_dim,))
        self.w_fc1 = init(ks[4], (embed_dim, self.hidden)).astype(compute_dtype)
        self.b_fc1 = init(ks[5], (self.hidden,))
        self.w_fc2 = init(ks[6], (self.hidden, embed_dim)).astype(compute_dtype)
        self.b_fc2 = init(ks[7], (embed_dim,))
        # LayerNorm affine params (randomized around PyTorch init for a real test)
        self.g1 = 1.0 + 0.1 * jax.random.normal(ks[8], (embed_dim,), jnp.float32)
        self.be1 = 0.1 * jax.random.normal(ks[9], (embed_dim,), jnp.float32)
        self.g2 = 1.0 + 0.1 * jax.random.normal(ks[10], (embed_dim,), jnp.float32)
        self.be2 = 0.1 * jax.random.normal(ks[11], (embed_dim,), jnp.float32)

    def __call__(self, x):
        B, N, C = x.shape
        H, hd = self.num_heads, self.head_dim
        BN = B * N
        tm = min(self.row_block, BN)

        x2d = x.reshape(BN, C)

        # ---- attention branch: fused LN + qkv projection -------------------
        qkv = ln_linear(x2d, self.g1, self.be1, self.w_qkv, self.b_qkv,
                        apply_gelu=False, tm=tm)                    # (BN, 3C)
        qkv = qkv.reshape(B, N, 3, H, hd)
        qkv = jnp.transpose(qkv, (2, 0, 3, 1, 4))                   # (3, B, H, N, hd)
        q, k, v = qkv[0], qkv[1], qkv[2]

        ctx = attention(q, k, v, scale=self.scale)                  # (B, H, N, hd)
        ctx2d = jnp.transpose(ctx, (0, 2, 1, 3)).reshape(BN, C)

        # out-projection with the residual add fused into the epilogue
        x1 = linear_residual(ctx2d, self.w_proj, self.b_proj, x2d, tm=tm)

        # ---- MLP branch: fused LN + fc1 + GELU, then fc2 + residual --------
        h = ln_linear(x1, self.g2, self.be2, self.w_fc1, self.b_fc1,
                      apply_gelu=True, tm=tm)                       # (BN, hidden)
        out2d = linear_residual(h, self.w_fc2, self.b_fc2, x1, tm=tm)

        return out2d.reshape(B, N, C)


# --------------------------------------------------------------------------
# Pure-JAX reference of the same forward (eval mode, tanh-GELU)
# --------------------------------------------------------------------------
def reference_forward(x, blk):
    B, N, C = x.shape
    H, hd = blk.num_heads, blk.head_dim

    def ln(t, g, b):
        mu = jnp.mean(t, -1, keepdims=True)
        tc = t - mu
        var = jnp.mean(tc * tc, -1, keepdims=True)
        return tc * jax.lax.rsqrt(var + _LN_EPS) * g + b

    xn = ln(x, blk.g1, blk.be1)
    qkv = xn @ blk.w_qkv.astype(jnp.float32) + blk.b_qkv
    qkv = qkv.reshape(B, N, 3, H, hd).transpose(2, 0, 3, 1, 4)
    q, k, v = qkv[0], qkv[1], qkv[2]
    attn = jnp.einsum('bhqd,bhkd->bhqk', q, k) * blk.scale
    attn = jax.nn.softmax(attn, axis=-1)
    ctx = jnp.einsum('bhqk,bhkd->bhqd', attn, v)
    ctx = ctx.transpose(0, 2, 1, 3).reshape(B, N, C)
    x1 = x + ctx @ blk.w_proj.astype(jnp.float32) + blk.b_proj
    hdn = _gelu_tanh(ln(x1, blk.g2, blk.be2) @ blk.w_fc1.astype(jnp.float32) + blk.b_fc1)
    return x1 + hdn @ blk.w_fc2.astype(jnp.float32) + blk.b_fc2


if __name__ == "__main__":
    # small shapes consistent with the module
    B, N = 2, 8
    embed_dim, num_heads, mlp_ratio, dropout = 32, 4, 4.0, 0.0

    key = jax.random.PRNGKey(0)
    k_params, k_x = jax.random.split(key)

    # row_block=8 so the toy run exercises the tiled/pipelined grid (grid=(2,));
    # leave the default (256) for production token counts.
    block = EncoderBlockPallas(embed_dim, num_heads, mlp_ratio, dropout,
                               k_params, row_block=8)

    x = jax.random.normal(k_x, (B, N, embed_dim), dtype=jnp.float32)

    out = block(x)
    out = jax.block_until_ready(out)

    ref = reference_forward(x, block)
    assert out.shape == (B, N, embed_dim), out.shape
    assert jnp.allclose(out, ref, atol=2e-3, rtol=2e-3), \
        float(jnp.max(jnp.abs(out - ref)))

    print("KERNEL_OK")
</pallas_src>

<mosaic_0001>
module attributes {stable_mosaic.version = 11 : i64} {
  func.func @_ln_matmul_kernel(%arg0: i32, %arg1: memref<8x32xf32, #tpu.memory_space<vmem>>, %arg2: memref<1x32xf32, #tpu.memory_space<vmem>>, %arg3: memref<1x32xf32, #tpu.memory_space<vmem>>, %arg4: memref<32x96xf32, #tpu.memory_space<vmem>>, %arg5: memref<1x96xf32, #tpu.memory_space<vmem>>, %arg6: memref<8x96xf32, #tpu.memory_space<vmem>>) attributes {dimension_semantics = [#tpu.dimension_semantics<parallel>], iteration_bounds = array<i64: 2>, scalar_prefetch = 0 : i64, scratch_operands = 0 : i64, tpu.core_type = #tpu.core_type<tc>, window_params = [{transform_indices = @transform_0, window_bounds = array<i64: 8, 32>}, {pipeline_mode = #tpu.pipeline_mode<synchronous>, transform_indices = @transform_1, window_bounds = array<i64: 1, 32>}, {pipeline_mode = #tpu.pipeline_mode<synchronous>, transform_indices = @transform_2, window_bounds = array<i64: 1, 32>}, {pipeline_mode = #tpu.pipeline_mode<synchronous>, transform_indices = @transform_3, window_bounds = array<i64: 32, 96>}, {pipeline_mode = #tpu.pipeline_mode<synchronous>, transform_indices = @transform_4, window_bounds = array<i64: 1, 96>}, {transform_indices = @transform_5, window_bounds = array<i64: 8, 96>}]} {
    %c0 = arith.constant 0 : index
    %c0_0 = arith.constant 0 : index
    %0 = vector.load %arg1[%c0, %c0_0] : memref<8x32xf32, #tpu.memory_space<vmem>>, vector<8x32xf32>
    %cst = arith.constant dense<0.000000e+00> : vector<8xf32>
    %1 = vector.multi_reduction <add>, %0, %cst [1] : vector<8x32xf32> to vector<8xf32>
    %2 = vector.shape_cast %1 : vector<8xf32> to vector<8x1xf32>
    %cst_1 = arith.constant 3.200000e+01 : f32
    %3 = vector.broadcast %cst_1 : f32 to vector<8x1xf32>
    %4 = arith.divf %2, %3 : vector<8x1xf32>
    %5 = vector.broadcast %4 : vector<8x1xf32> to vector<8x32xf32>
    %6 = arith.subf %0, %5 : vector<8x32xf32>
    %7 = arith.mulf %6, %6 : vector<8x32xf32>
    %cst_2 = arith.constant dense<0.000000e+00> : vector<8xf32>
    %8 = vector.multi_reduction <add>, %7, %cst_2 [1] : vector<8x32xf32> to vector<8xf32>
    %9 = vector.shape_cast %8 : vector<8xf32> to vector<8x1xf32>
    %cst_3 = arith.constant 3.200000e+01 : f32
    %10 = vector.broadcast %cst_3 : f32 to vector<8x1xf32>
    %11 = arith.divf %9, %10 : vector<8x1xf32>
    %cst_4 = arith.constant 9.99999974E-6 : f32
    %12 = vector.broadcast %cst_4 : f32 to vector<8x1xf32>
    %13 = arith.addf %11, %12 : vector<8x1xf32>
    %14 = math.rsqrt %13 : vector<8x1xf32>
    %15 = vector.broadcast %14 : vector<8x1xf32> to vector<8x32xf32>
    %16 = arith.mulf %6, %15 : vector<8x32xf32>
    %c0_5 = arith.constant 0 : index
    %c0_6 = arith.constant 0 : index
    %17 = vector.load %arg2[%c0_5, %c0_6] : memref<1x32xf32, #tpu.memory_space<vmem>>, vector<1x32xf32>
    %18 = vector.broadcast %17 : vector<1x32xf32> to vector<8x32xf32>
    %19 = arith.mulf %16, %18 : vector<8x32xf32>
    %c0_7 = arith.constant 0 : index
    %c0_8 = arith.constant 0 : index
    %20 = vector.load %arg3[%c0_7, %c0_8] : memref<1x32xf32, #tpu.memory_space<vmem>>, vector<1x32xf32>
    %21 = vector.broadcast %20 : vector<1x32xf32> to vector<8x32xf32>
    %22 = arith.addf %19, %21 : vector<8x32xf32>
    %c0_9 = arith.constant 0 : index
    %c0_10 = arith.constant 0 : index
    %23 = vector.load %arg4[%c0_9, %c0_10] : memref<32x96xf32, #tpu.memory_space<vmem>>, vector<32x96xf32>
    %cst_11 = arith.constant dense<0.000000e+00> : vector<8x96xf32>
    %24 = tpu.matmul %22, %23, %cst_11 {dimension_numbers = #tpu.dot_dimension_numbers<[1], [0], [0], [1], [0, 0, 1, 1], [], []>} : vector<8x32xf32>, vector<32x96xf32>, vector<8x96xf32> -> vector<8x96xf32>
    %c0_12 = arith.constant 0 : index
    %c0_13 = arith.constant 0 : index
    %25 = vector.load %arg5[%c0_12, %c0_13] : memref<1x96xf32, #tpu.memory_space<vmem>>, vector<1x96xf32>
    %26 = vector.broadcast %25 : vector<1x96xf32> to vector<8x96xf32>
    %27 = arith.addf %24, %26 : vector<8x96xf32>
    %c0_14 = arith.constant 0 : index
    %c0_15 = arith.constant 0 : index
    %28 = vector.load %arg6[%c0_14, %c0_15] : memref<8x96xf32, #tpu.memory_space<vmem>>, vector<8x96xf32>
    tpu.vector_store %arg6[%c0_14, %c0_15], %27 {strides = array<i32>} : memref<8x96xf32, #tpu.memory_space<vmem>>, vector<8x96xf32>,
    return
  }
  func.func @transform_0(%arg0: i32) -> (i32, i32) {
    %c0_i32 = arith.constant 0 : i32
    %c0_i32_0 = arith.constant 0 : i32
    return %arg0, %c0_i32 : i32, i32
  }
  func.func @transform_1(%arg0: i32) -> (i32, i32) {
    %c0_i32 = arith.constant 0 : i32
    %c0_i32_0 = arith.constant 0 : i32
    %c0_i32_1 = arith.constant 0 : i32
    return %c0_i32, %c0_i32_0 : i32, i32
  }
  func.func @transform_2(%arg0: i32) -> (i32, i32) {
    %c0_i32 = arith.constant 0 : i32
    %c0_i32_0 = arith.constant 0 : i32
    %c0_i32_1 = arith.constant 0 : i32
    return %c0_i32, %c0_i32_0 : i32, i32
  }
  func.func @transform_3(%arg0: i32) -> (i32, i32) {
    %c0_i32 = arith.constant 0 : i32
    %c0_i32_0 = arith.constant 0 : i32
    %c0_i32_1 = arith.constant 0 : i32
    return %c0_i32, %c0_i32_0 : i32, i32
  }
  func.func @transform_4(%arg0: i32) -> (i32, i32) {
    %c0_i32 = arith.constant 0 : i32
    %c0_i32_0 = arith.constant 0 : i32
    %c0_i32_1 = arith.constant 0 : i32
    return %c0_i32, %c0_i32_0 : i32, i32
  }
  func.func @transform_5(%arg0: i32) -> (i32, i32) {
    %c0_i32 = arith.constant 0 : i32
    %c0_i32_0 = arith.constant 0 : i32
    return %arg0, %c0_i32 : i32, i32
  }
}

</mosaic_0001>

<bundles_post_ra>
// kernel: tpu_custom_call.1
= control target key start
LH: loop header
LB: loop body
LE: loop exit
PB: predicated region body
PF: predicated region fallthrough
CT: control target
= control target key end

     0   :  { %10 = vsyncpa [#allocation3], 0  ;;  %s951_s0 = inlined_call_operand.hbm [shape: f32[16,32], index: 0, kind: input, shape index: {}]   ;;  %s952_s1 = inlined_call_operand.vmem [shape: f32[1,32], index: 1, kind: input, shape index: {}]   ;;  %s953_s2 = inlined_call_operand.vmem [shape: f32[1,32], index: 2, kind: input, shape index: {}]   ;;  %s954_s3 = inlined_call_operand.hbm [shape: f32[32,96], index: 3, kind: input, shape index: {}]   ;;  %s955_s4 = inlined_call_operand.vmem [shape: f32[1,96], index: 4, kind: input, shape index: {}]   ;;  %s956_s5 = inlined_call_operand.hbm [shape: f32[16,96], index: 5, kind: output, shape index: {}]  }
   0x1   :  { %12 = vsyncpa [#allocation3 + $0x1], 0 }
   0x2   :  { %13 = vsyncpa [#allocation6], 0 }
   0x3   :  { %14 = vsyncpa [#allocation4], 0 }
   0x4   :  { %16 = vsyncpa [#allocation4 + $0x1], 0  ;;  %s739_s18 = smov 0   ;;  %s741_s19 = smov 0  }
   0x5   :  { %s743_s20 = smov 0   ;;  %s745_s21 = smov 0  }
   0x6 LB: > { %s760_s22 = sadd.s32 4294967295, %s699_s21   ;;  %s467_s23 = sadd.s32 4294967294, %s699_s21   ;;  %s699_s21 = sphi %s745_s21, %s976_s21   ;;  %s695_s20 = sphi %s743_s20, %s975_s20   ;;  %s691_s19 = sphi %s741_s19, %s974_s19   ;;  %s687_s18 = sphi %s739_s18, %s973_s18  }
   0x7   : > { %p42_p0 = scmp.ne.s32.totalorder %s691_s19, %s687_s18  ;;  %p957_p1 = scmp.eq.s32.totalorder %s760_s22, 0 }
   0x8   : > { %p156_p3 = scmp.eq.s32.totalorder %s467_s23, 1  ;;  %p468_p5 = scmp.ge.s32.totalorder %s699_s21, 1 }
   0x9   : > { %p769_p4 = por %p957_p1, %p42_p0  ;;  %p163_p7 = scmp.lt.s32.totalorder %s699_s21, 3 }
   0xa   : > { %p774_p6 = por %p156_p3, %p42_p0  ;;  %s701_s27 = smov [#allocation5]  }
   0xb   : > { %s960_s24 = scalar_select %p769_p4, 1, 0 }
   0xc   : > { %s961_s25 = scalar_select %p774_p6, 1, 0 }
   0xd   : > { %p779_p8 = pnand %p468_p5, %p163_p7  ;;  %s181_s28 = sshll.u32 %s701_s27, 4  ;;  %s783_s28 = int_to_ptr.vmem [resolvable:$true] %s181_s28 }
   0xe   : > { %s795_s30 = sadd.s32 1, %s699_s21   ;;  %s29_s6 = sadd.s32 1, %s695_s20 }
   0xf   : > { %s962_s26 = scalar_select %p779_p8, 1, 0 }
  0x10   : > { %p515_p9 = pneg %p779_p8  ;;  %s26_s7 = ssub.s32 %s699_s21, %s795_s30 }
  0x11   : > { %s571_s10 = scalar_lea.hbm %s954_s3, 512 }
  0x12   : > { %p790_p11 = pnand %p515_p9, %p957_p1  ;;  %p572_p12 = scmp.ne.s32.totalorder %s954_s3, %s571_s10 }
  0x13   : > { %p578_p5 = scmp.lt.u32.totalorder %s571_s10, %s954_s3 }
  0x14   : > { %p573_p13 = pneg %p790_p11 }
  0x16   : > { %p574_p0 = pnand %p573_p13, %p572_p12 }
  0x18   : > { %p575_p3 = pneg %p574_p0 }
  0x1a   : > { %p580_p7 = pnand %p578_p5, %p575_p3 }
  0x1c   : > { %583 = shalt.err (!%p580_p7)
}
  0x1d   : > { %s584_s15 = scalar_lea.vmem %s783_s28, 512  ;;  %p592_p2 = scmp.lt.s32.totalorder %s783_s28, %s783_s28 }
  0x1e   : > { %p585_p9 = scmp.ne.s32.totalorder %s783_s28, %s584_s15  ;;  %p593_p6 = scmp.lt.s32.totalorder %s584_s15, %s584_s15 }
  0x20   : > { %p587_p10 = pnand %p585_p9, %p573_p13  ;;  %p594_p4 = por %p593_p6, %p592_p2 }
  0x22   : > { %p588_p1 = pneg %p587_p10 }
  0x24   : > { %p595_p8 = pnand %p594_p4, %p588_p1 }
  0x26   : > { %598 = shalt.err (!%p595_p8)
}
  0x27   : > { %s702_s16 = smov 128   ;;  %s703_s17 = smov 8  }
  0x28   : > { %518 = dma.hbm_to_vmem [thread:$0]  (!%p790_p11), %s954_s3, 512, %s783_s28, [#allocation6], %s702_s16, %s702_s16, %s703_s17  }
  0x29   : > { %p27_p2 = scmp.eq.s32.totalorder %s26_s7, 0  ;;  %p36_p1 = scmp.ne.s32.totalorder %s695_s20, %s691_s19 }
  0x2a   : > { %p37_p4 = scmp.eq.s32.totalorder %s699_s21, 0  ;;  %p528_p6 = scmp.lt.s32.totalorder %s699_s21, 2 }
  0x2b   : > { %s826_s8 = scalar_select %p27_p2, %s695_s20, %s29_s6  }
  0x2c   : > { %p38_p8 = por %p37_p4, %p36_p1  ;;  %p964_p10 = scmp.eq.s32.totalorder %s760_s22, 1 }
  0x2d   : > { %s198_s10 = sand.u32 1, %s695_s20   ;;  %s472_s11 = sshll.u32 %s699_s21, 7 }
  0x2e   : > { %p830_p12 = por %p964_p10, %p36_p1  ;;  %s471_s12 = sshll.u32 %s198_s10, 3 }
  0x2f   : > { %s839_s14 = scalar_lea.hbm %s951_s0, %s472_s11  ;;  %s202_s28 = scalar_lea.vmem [#allocation2], %s471_s12 }
  0x30   : > { %s209_s6 = sshll.u32 %s202_s28, 4  ;;  %p841_p11 = pnand %p528_p6, %p38_p8  ;;  %s845_s6 = int_to_ptr.vmem [resolvable:$true] %s209_s6 }
  0x31   : > { %s199_s15 = scalar_lea.sflag [#allocation3], %s198_s10  ;;  %s599_s16 = scalar_lea.hbm %s839_s14, 128 }
  0x32   : > { %p600_p13 = scmp.ne.s32.totalorder %s839_s14, %s599_s16  ;;  %p601_p0 = pneg %p841_p11 }
  0x33   : > { %s604_s27 = scalar_lea.hbm %s951_s0, 256  ;;  %p605_p7 = scmp.lt.u32.totalorder %s839_s14, %s951_s0 }
  0x34   : > { %p602_p3 = pnand %p601_p0, %p600_p13  ;;  %p606_p9 = scmp.lt.u32.totalorder %s604_s27, %s599_s16 }
  0x35   : > { %p608_p1 = scmp.lt.u32.totalorder %s599_s16, %s839_s14 }
  0x36   : > { %p603_p5 = pneg %p602_p3  ;;  %p607_p2 = por %p606_p9, %p605_p7 }
  0x38   : > { %p609_p4 = por %p608_p1, %p607_p2 }
  0x3a   : > { %p610_p6 = pnand %p609_p4, %p603_p5 }
  0x3c   : > { %613 = shalt.err (!%p610_p6)
}
  0x3d   : > { %s614_s10 = scalar_lea.vmem %s845_s6, 128  ;;  %s704_s29 = smov [#allocation2]  }
  0x3e   : > { %p615_p8 = scmp.ne.s32.totalorder %s845_s6, %s614_s10  ;;  %s619_s13 = sshll.u32 %s704_s29, 4  ;;  %s620_s13 = int_to_ptr.vmem [resolvable:$false] %s619_s13 }
  0x3f   : > { %s621_s28 = scalar_lea.vmem %s620_s13, 256  ;;  %p622_p3 = scmp.lt.s32.totalorder %s845_s6, %s620_s13 }
  0x40   : > { %p617_p10 = pnand %p615_p8, %p601_p0  ;;  %p623_p7 = scmp.lt.s32.totalorder %s621_s28, %s614_s10 }
  0x42   : > { %p618_p13 = pneg %p617_p10  ;;  %p624_p9 = por %p623_p7, %p622_p3 }
  0x44   : > { %p625_p2 = pnand %p624_p9, %p618_p13 }
  0x46   : > { %628 = shalt.err (!%p625_p2)
}
  0x47   : > { %522 = dma.hbm_to_vmem [thread:$0]  (!%p841_p11), %s839_s14, 128, %s845_s6, %s199_s15  }
  0x48   : > { %p967_p5 = scmp.ne.s32.totalorder %s962_s26, 0 }
  0x49   : > { %s875_s16 = sand.u32 (!%p967_p5), 1, %s691_s19   ;;  %p968_p0 = scmp.ne.s32.totalorder (!%p967_p5), %s960_s24, 0 }
  0x4a   : > { %218 = sbr.rel (%p967_p5) target bundleno = 627 (0x273), region = 40  ;;  %s474_s17 = sshll.u32 (!%p967_p5), %s875_s16, 3 }
  0x4b   : > { %s221_s23 = scalar_lea.sflag (!%p967_p5), [#allocation3], %s875_s16  ;;  %s224_s27 = scalar_lea.vmem (!%p967_p5), [#allocation2], %s474_s17 }
  0x51   : > { %674 = dma.done.wait (%p968_p0), %s221_s23, 128  }
  0x52   : > { %676 = vsyncadd (%p968_p0), %s221_s23, 4294967168  ;;  %p969_p11 = scmp.eq.s32.totalorder %s760_s22, 0 }
  0x54   : > { %678 = dma.done.wait (%p969_p11), [#allocation6], 512   ;;  %p970_p1 = pmov %p969_p11 }
  0x55   : > { %vm256_vm0 = vcmask 261120   ;;  %v255_v0 = vld [vmem:[%s224_s27] sm:$0xff]  ;;  %v287_v7 = vld [vmem:[#allocation5] sm:$0xff]  ;;  %v288_v8 = vld [vmem:[#allocation5 + $0x8] sm:$0xff]  ;;  %v705_v10 = vmov 0.0|0.0   ;;  %vm706_vm1 = vmmov 0  }
  0x56   : > { %680 = vsyncadd (%p970_p1), [#allocation6], 4294966784  ;;  %v257_v1 = vsel %vm256_vm0, %v255_v0, 0.0  ;;  %v289_v9 = vld [vmem:[#allocation5 + $0x10] sm:$0xff]  ;;  %501 = vmatprep.subr.bf16.mxu0 %v705_v10  ;;  %v502_v11 = vpack.c.bf16 %v288_v8, %v287_v7  ;;  %v290_v12 = vld [vmem:[#allocation5 + $0x18] sm:$0xff]  ;;  %v707_v13 = vmov 0.0  }
  0x57   : > { %258 = vadd.xlane.f32.xlu0 %v257_v1  ;;  %498 = vmatprep.mubr.msk.f32.mxu0 %vm706_vm1, %v707_v13  ;;  %v505_v14 = vpack.c.bf16 %v290_v12, %v289_v9  ;;  %v477_v19 = vld [vmem:[%s952_s1] ss:$0 sm:$0xff]  ;;  %s482_s11 = sshll.u32 %s760_s22, 7  ;;  %s254_s12 = scalar_lea.vmem [#allocation7], %s474_s17  ;;  %vm371_vm2 = vcmask 785408  }
  0x58   : > { %503 = vmatpush3.bf16.msra.mxu0 %v502_v11  ;;  %v478_v21 = vld [vmem:[%s953_s2] ss:$0 sm:$0xff]  ;;  %s387_s10 = sshll.u32 %s254_s12, 4  ;;  %s907_s28 = scalar_lea.hbm %s956_s5, %s482_s11  ;;  %s909_s10 = int_to_ptr.vmem [resolvable:$true] %s387_s10 }
  0x59   : > { %504 = vmatprep.subr.bf16.mxu0 %v705_v10  ;;  %v479_v24 = vld [vmem:[%s955_s4] ss:$0 sm:$0xff]  ;;  %s374_s23 = scalar_lea.sflag [#allocation4], %s875_s16  ;;  %s629_s22 = scalar_lea.vmem %s909_s10, 128 }
  0x5a   : > { %p630_p4 = scmp.ne.s32.totalorder %s909_s10, %s629_s22  ;;  %s708_s17 = smov [#allocation7]  }
  0x5b   : > { %s633_s27 = sshll.u32 %s708_s17, 4  ;;  %s634_s27 = int_to_ptr.vmem [resolvable:$false] %s633_s27 }
  0x5c   : > { %506 = vmatpush3.bf16.msra.mxu0 %v505_v14  ;;  %p631_p6 = pnand %p630_p4, %p830_p12  ;;  %s635_s24 = scalar_lea.vmem %s634_s27, 256 }
  0x5d   : > { %p636_p10 = scmp.lt.s32.totalorder %s909_s10, %s634_s27  ;;  %p637_p13 = scmp.lt.s32.totalorder %s635_s24, %s629_s22 }
  0x5e   : > { %p632_p8 = pneg %p631_p6 }
  0x5f   : > { %p638_p3 = por %p637_p13, %p636_p10 }
  0x61   : > { %p639_p7 = pnand %p638_p3, %p632_p8 }
  0xe4   : > { %v259_v2 = vpop.xlane.xlu0 %258 }
  0xe5   : > { %v261_v3 = vmul.f32 0.03125, %v259_v2 }
  0xe7   : > { %v262_v4 = vsub.f32 %v255_v0, %v261_v3 }
  0xe9   : > { %v263_v5 = vmul.f32 %v262_v4, %v262_v4 }
  0xeb   : > { %v264_v6 = vsel %vm256_vm0, %v263_v5, 0.0 }
  0xec   : > { %265 = vadd.xlane.f32.xlu0 %v264_v6 }
 0x179   : > { %v266_v15 = vpop.xlane.xlu0 %265 }
 0x17a   : > { %v267_v16 = vmul.f32 0.03125, %v266_v15 }
 0x17c   : > { %v268_v17 = vadd.f32 1e-05, %v267_v16 }
 0x17e   : > { %569 = vrsqrt.f32 %v268_v17 }
 0x188   : > { %v570_v18 = vpop.eup %569 }
 0x189   : > { %v270_v20 = vmul.f32 %v570_v18, %v262_v4 }
 0x18b   : > { %v278_v22 = vmul.f32 %v477_v19, %v270_v20 }
 0x18d   : > { %v286_v23 = vadd.f32 %v478_v21, %v278_v22 }
 0x18f   : > { %499 = vmatmul.mubr.msk.f32.vlgmr.msra.gmra.mrb[0].mxu0 %vm256_vm0, %v286_v23 }
 0x262   : > { %v367_v25 = vpop.f32.mrb[0].mxu0 }
 0x263   : > { %v368_v26 = vadd.f32 %v479_v24, %v367_v25  ;;  %v500_v27 = vpop.f32.mrb[1].mxu0 }
 0x265   : > { %372 = vst.msk [vmem:[%s254_s12] sm:$0xff] %vm371_vm2, %v368_v26 }
 0x266   : > { %642 = shalt.err (!%p639_p7)
}
 0x267   : > { %s643_s16 = scalar_lea.hbm %s907_s28, 128  ;;  %s647_s6 = scalar_lea.hbm %s956_s5, 256 }
 0x268   : > { %p644_p9 = scmp.ne.s32.totalorder %s907_s28, %s643_s16  ;;  %p648_p0 = scmp.lt.u32.totalorder %s907_s28, %s956_s5 }
 0x269   : > { %p649_p11 = scmp.lt.u32.totalorder %s647_s6, %s643_s16  ;;  %p651_p4 = scmp.lt.u32.totalorder %s643_s16, %s907_s28 }
 0x26a   : > { %p645_p2 = pnand %p644_p9, %p830_p12 }
 0x26b   : > { %p650_p1 = por %p649_p11, %p648_p0 }
 0x26c   : > { %p646_p5 = pneg %p645_p2 }
 0x26d   : > { %p652_p6 = por %p651_p4, %p650_p1 }
 0x26f   : > { %p653_p8 = pnand %p652_p6, %p646_p5 }
 0x271   : > { %656 = shalt.err (!%p653_p8)
}
 0x272   : > { %513 = dma.vmem_to_hbm [thread:$0]  (%p830_p12), %s909_s10, 128, %s907_s28, %s374_s23  }
 0x273 PF: > { %s399_s11 = sand.u32 1, %s687_s18   ;;  %p971_p10 = scmp.ne.s32.totalorder %s961_s25, 0 }
 0x274   : > { %p972_p13 = scmp.ge.s32.totalorder %s699_s21, 2  ;;  %s400_s12 = scalar_lea.sflag [#allocation4], %s399_s11 }
 0x276   : > { %p524_p3 = pnand %p972_p13, %p971_p10 }
 0x278   : > { %682 = dma.done.wait (!%p524_p3), %s400_s12, 128  }
 0x279   : > { %684 = vsyncadd (!%p524_p3), %s400_s12, 4294967168  ;;  %p19_p7 = scmp.ge.s32.totalorder %s795_s30, 4   ;;  %s973_s18 = smov %s691_s19 }
 0x27a   : > { %s974_s19 = smov %s695_s20  ;;  %s975_s20 = smov %s826_s8 }
 0x27b   : > { %s976_s21 = smov %s795_s30  ;;  %21 = sbr.rel (!%p19_p7) target bundleno = 6 (0x6), region = 89 }
 0x282   :  { %405 = vsyncpa [#allocation3], 1 }
 0x283   :  { %407 = vsyncpa [#allocation3 + $0x1], 1 }
 0x284   :  { %408 = vsyncpa [#allocation6], 1 }
 0x285   :  { %409 = vsyncpa [#allocation4], 1 }
 0x286   :  { %411 = vsyncpa [#allocation4 + $0x1], 1 }

</bundles_post_ra>
